<compile_context>
chip_gen: v7x
topology: tpu7x:2x2x1
jax: 0.10.0
libtpu: 0.0.40
codegen_flags: <defaults>
</compile_context>

<pallas_src>
import functools

import jax
import jax.numpy as jnp
from jax.experimental import pallas as pl
from jax.experimental.pallas import tpu as pltpu


def _focal_tversky_sums_kernel(x_ref, t_ref, out_ref,
                               sp_acc, st_acc, spt_acc,
                               *, chunks_per_split, total_elems, needs_mask):
    """Grid = (N, SPLITS, CHUNKS).  Blocks: x/t -> (1, C, TR, 128),
    out -> (1, 1, C, 3) holding [sum(p), sum(t), sum(p*t)] per channel."""
    u = pl.program_id(1)          # spatial split (dual-TC on v7x when N == 1)
    s = pl.program_id(2)          # spatial chunk inside the split

    @pl.when(s == 0)
    def _():
        sp_acc[...] = jnp.zeros_like(sp_acc)
        st_acc[...] = jnp.zeros_like(st_acc)
        spt_acc[...] = jnp.zeros_like(spt_acc)

    x = x_ref[0].astype(jnp.float32)    # (C, TR, 128)
    t = t_ref[0].astype(jnp.float32)    # (C, TR, 128)
    c, tr, lanes = x.shape

    # Channel softmax: reductions over the leading (untiled) C axis are plain
    # VPU max/add across C full (TR, 128) tiles; one exact reciprocal (EUP).
    m = jnp.max(x, axis=0, keepdims=True)        # (1, TR, 128)
    e = jnp.exp(x - m)                           # (C, TR, 128)
    denom = jnp.sum(e, axis=0, keepdims=True)    # (1, TR, 128)
    p = e * (1.0 / denom)                        # (C, TR, 128)

    if needs_mask:
        # Zero the softmax mass of padded voxels.  Targets are zero-padded, so
        # only sum(p) needs masking; masking p itself also covers sum(p*t).
        row0 = (u * chunks_per_split + s) * tr
        row = jax.lax.broadcasted_iota(jnp.int32, (tr, lanes), 0) + row0
        lane = jax.lax.broadcasted_iota(jnp.int32, (tr, lanes), 1)
        valid = (row * lanes + lane) < total_elems
        p = p * valid.astype(jnp.float32)[None]

    # Fold TR rows to a single (8, 128) tile per channel with pure VPU
    # vreg-adds (layout-free reshape; no XLU), then update the tiny scratch.
    g = tr // 8
    sp_acc[...] += jnp.sum(p.reshape(c, g, 8, lanes), axis=1)
    st_acc[...] += jnp.sum(t.reshape(c, g, 8, lanes), axis=1)
    spt_acc[...] += jnp.sum((p * t).reshape(c, g, 8, lanes), axis=1)

    @pl.when(s == pl.num_programs(2) - 1)
    def _():
        def _reduce(acc_ref):                    # (C, 8, 128) -> (C, 1)
            return jnp.sum(jnp.sum(acc_ref[...], axis=2, keepdims=True), axis=1)

        out_ref[0, 0, :, 0:1] = _reduce(sp_acc)    # sum(p)
        out_ref[0, 0, :, 1:2] = _reduce(st_acc)    # sum(t)
        out_ref[0, 0, :, 2:3] = _reduce(spt_acc)   # sum(p * t) = TP


def _choose_row_tile(num_rows, channels, num_splits, bytes_per_voxel_channel,
                     max_row_tile=1024, vmem_input_budget=20 * 1024 * 1024):
    """Row tile TR for the (TR, 128) spatial blocks.

    TR is always a multiple of 16 (clean bf16 sublane packing for the target
    stream), capped by `max_row_tile`, by the per-split row count, and by a
    double-buffered-input VMEM budget that is safe on v7x (64 MiB physical)
    as well as v5e/v6e.
    """
    budget_rows = vmem_input_budget // (2 * channels * 128 * bytes_per_voxel_channel)
    rows_per_split = -(-num_rows // num_splits)                 # ceil div
    tr = min(max_row_tile, budget_rows, -(-rows_per_split // 16) * 16)
    tr = max(16, (tr // 16) * 16)
    return int(tr)


def no_bg_focal_tversky_loss(inputs, targets, *,
                             smooth=1e-6, alpha=0.7, beta=0.3, gamma=0.75,
                             max_row_tile=1024, targets_dtype=jnp.bfloat16,
                             num_splits=None):
    """inputs, targets: (N, C, D, H, W).  Returns scalar loss (float32).

    targets_dtype=bfloat16 is exact for one-hot {0,1} labels and halves target
    HBM traffic; pass jnp.float32 if exact soft targets are required.  bf16
    logits are also accepted (upcast to f32 in-kernel before the softmax).
    """
    N, C = inputs.shape[0], inputs.shape[1]
    assert targets.shape == inputs.shape
    S = 1
    for d in inputs.shape[2:]:
        S *= int(d)

    if num_splits is None:
        # Use both v7x TensorCores even for the common N=1 big-volume case.
        num_splits = 2 if N == 1 else 1

    bytes_per_vc = jnp.dtype(inputs.dtype).itemsize + jnp.dtype(targets_dtype).itemsize
    r_raw = -(-S // 128)                                        # ceil(S / 128)
    tr = _choose_row_tile(r_raw, C, num_splits, bytes_per_vc,
                          max_row_tile=max_row_tile)
    step_rows = num_splits * tr
    r_pad = -(-r_raw // step_rows) * step_rows
    s_pad = r_pad * 128
    chunks_per_split = r_pad // step_rows
    needs_mask = (s_pad != S)

    x = inputs.reshape(N, C, S)
    t = targets.reshape(N, C, S).astype(targets_dtype)
    if needs_mask:
        x = jnp.pad(x, ((0, 0), (0, 0), (0, s_pad - S)))
        t = jnp.pad(t, ((0, 0), (0, 0), (0, s_pad - S)))
    x = x.reshape(N, C, r_pad, 128)
    t = t.reshape(N, C, r_pad, 128)

    kernel = functools.partial(
        _focal_tversky_sums_kernel,
        chunks_per_split=chunks_per_split,
        total_elems=S,
        needs_mask=needs_mask,
    )

    in_map = lambda n, u, s: (n, 0, u * chunks_per_split + s, 0)

    sums = pl.pallas_call(
        kernel,
        out_shape=jax.ShapeDtypeStruct((N, num_splits, C, 3), jnp.float32),
        grid_spec=pltpu.PrefetchScalarGridSpec(
            num_scalar_prefetch=0,
            grid=(N, num_splits, chunks_per_split),
            in_specs=[
                pl.BlockSpec((1, C, tr, 128), in_map),
                pl.BlockSpec((1, C, tr, 128), in_map),
            ],
            out_specs=pl.BlockSpec((1, 1, C, 3), lambda n, u, s: (n, u, 0, 0)),
            scratch_shapes=[pltpu.VMEM((C, 8, 128), jnp.float32)] * 3,
        ),
        compiler_params=pltpu.CompilerParams(
            # Batch and split axes are independent -> shard across TCs on v7x;
            # the spatial-chunk axis carries the accumulators -> "arbitrary".
            dimension_semantics=("parallel", "parallel", "arbitrary"),
            # Raise v5e's 16 MiB scoped default; safe on all generations.
            vmem_limit_bytes=32 * 1024 * 1024,
        ),
    )(x, t)

    # Tiny JAX epilogue: combine per-split partials and apply the Tversky
    # formula + mean over (N, C).
    sums = sums.sum(axis=1)                 # (N, C, 3)
    sp, st, tp = sums[..., 0], sums[..., 1], sums[..., 2]
    fp = sp - tp                            # sum((1-t)*p) = sum(p) - TP
    fn = st - tp                            # sum(t*(1-p)) = sum(t) - TP
    tversky = (tp + smooth) / (tp + alpha * fp + beta * fn + smooth)
    # Clamp: mathematically tversky <= 1; guard against fp rounding before the
    # fractional power (gamma = 0.75 would give NaN for negatives).
    return jnp.mean(jnp.maximum(1.0 - tversky, 0.0) ** gamma)


def _reference_loss(inputs, targets, smooth=1e-6, alpha=0.7, beta=0.3, gamma=0.75):
    p = jax.nn.softmax(inputs.astype(jnp.float32), axis=1)
    t = targets.astype(jnp.float32)
    tp = jnp.sum(p * t, axis=(2, 3, 4))
    fp = jnp.sum((1.0 - t) * p, axis=(2, 3, 4))
    fn = jnp.sum(t * (1.0 - p), axis=(2, 3, 4))
    tversky = (tp + smooth) / (tp + alpha * fp + beta * fn + smooth)
    return jnp.mean((1.0 - tversky) ** gamma)


if __name__ == "__main__":
    key = jax.random.PRNGKey(0)
    k1, k2, k3, k4 = jax.random.split(key, 4)

    # Case 1: (N, C, D, H, W) with spatial size a multiple of 128.
    N, C, D, H, W = 2, 4, 4, 8, 8
    x1 = jax.random.normal(k1, (N, C, D, H, W), dtype=jnp.float32)
    lbl1 = jax.random.randint(k2, (N, D, H, W), 0, C)
    t1 = jnp.transpose(jax.nn.one_hot(lbl1, C, dtype=jnp.float32),
                       (0, 4, 1, 2, 3))            # (N, C, D, H, W) one-hot
    loss1 = jax.block_until_ready(no_bg_focal_tversky_loss(x1, t1))
    ref1 = jax.block_until_ready(_reference_loss(x1, t1))
    assert jnp.allclose(loss1, ref1, rtol=1e-5, atol=1e-6), (loss1, ref1)

    # Case 2: N=1 (dual-TC split path) with an awkward spatial size (pad+mask).
    N2, C2, D2, H2, W2 = 1, 3, 3, 5, 7
    x2 = jax.random.normal(k3, (N2, C2, D2, H2, W2), dtype=jnp.float32)
    lbl2 = jax.random.randint(k4, (N2, D2, H2, W2), 0, C2)
    t2 = jnp.transpose(jax.nn.one_hot(lbl2, C2, dtype=jnp.float32),
                       (0, 4, 1, 2, 3))
    loss2 = jax.block_until_ready(no_bg_focal_tversky_loss(x2, t2))
    ref2 = jax.block_until_ready(_reference_loss(x2, t2))
    assert jnp.allclose(loss2, ref2, rtol=1e-5, atol=1e-6), (loss2, ref2)

    print("KERNEL_OK")
</pallas_src>

<mosaic_0001>
module attributes {stable_mosaic.version = 11 : i64} {
  func.func @_focal_tversky_sums_kernel(%arg0: i32, %arg1: i32, %arg2: i32, %arg3: memref<1x4x16x128xf32, #tpu.memory_space<vmem>>, %arg4: memref<1x4x16x128xbf16, #tpu.memory_space<vmem>>, %arg5: memref<1x1x4x3xf32, #tpu.memory_space<vmem>>, %arg6: memref<4x8x128xf32, #tpu.memory_space<vmem>>, %arg7: memref<4x8x128xf32, #tpu.memory_space<vmem>>, %arg8: memref<4x8x128xf32, #tpu.memory_space<vmem>>) attributes {dimension_semantics = [#tpu.dimension_semantics<parallel>, #tpu.dimension_semantics<parallel>, #tpu.dimension_semantics<arbitrary>], iteration_bounds = array<i64: 2, 1, 1>, scalar_prefetch = 0 : i64, scratch_operands = 3 : i64, tpu.core_type = #tpu.core_type<tc>, window_params = [{transform_indices = @transform_0, window_bounds = array<i64: 1, 4, 16, 128>}, {transform_indices = @transform_1, window_bounds = array<i64: 1, 4, 16, 128>}, {transform_indices = @transform_2, window_bounds = array<i64: 1, 1, 4, 3>}]} {
    %c0_i32 = arith.constant 0 : i32
    %0 = arith.cmpi eq, %arg2, %c0_i32 : i32
    %1 = arith.extui %0 : i1 to i32
    %c0_i32_0 = arith.constant 0 : i32
    %2 = arith.cmpi ne, %1, %c0_i32_0 : i32
    scf.if %2 {
      %cst_33 = arith.constant 0.000000e+00 : f32
      %55 = vector.broadcast %cst_33 : f32 to vector<4x8x128xf32>
      %c0_34 = arith.constant 0 : index
      %c0_35 = arith.constant 0 : index
      %c0_36 = arith.constant 0 : index
      %56 = vector.load %arg6[%c0_34, %c0_35, %c0_36] : memref<4x8x128xf32, #tpu.memory_space<vmem>>, vector<4x8x128xf32>
      tpu.vector_store %arg6[%c0_34, %c0_35, %c0_36], %55 {strides = array<i32>} : memref<4x8x128xf32, #tpu.memory_space<vmem>>, vector<4x8x128xf32>,
      %cst_37 = arith.constant 0.000000e+00 : f32
      %57 = vector.broadcast %cst_37 : f32 to vector<4x8x128xf32>
      %c0_38 = arith.constant 0 : index
      %c0_39 = arith.constant 0 : index
      %c0_40 = arith.constant 0 : index
      %58 = vector.load %arg7[%c0_38, %c0_39, %c0_40] : memref<4x8x128xf32, #tpu.memory_space<vmem>>, vector<4x8x128xf32>
      tpu.vector_store %arg7[%c0_38, %c0_39, %c0_40], %57 {strides = array<i32>} : memref<4x8x128xf32, #tpu.memory_space<vmem>>, vector<4x8x128xf32>,
      %cst_41 = arith.constant 0.000000e+00 : f32
      %59 = vector.broadcast %cst_41 : f32 to vector<4x8x128xf32>
      %c0_42 = arith.constant 0 : index
      %c0_43 = arith.constant 0 : index
      %c0_44 = arith.constant 0 : index
      %60 = vector.load %arg8[%c0_42, %c0_43, %c0_44] : memref<4x8x128xf32, #tpu.memory_space<vmem>>, vector<4x8x128xf32>
      tpu.vector_store %arg8[%c0_42, %c0_43, %c0_44], %59 {strides = array<i32>} : memref<4x8x128xf32, #tpu.memory_space<vmem>>, vector<4x8x128xf32>,
    } else {
    }
    %c0 = arith.constant 0 : index
    %c0_1 = arith.constant 0 : index
    %c0_2 = arith.constant 0 : index
    %c0_3 = arith.constant 0 : index
    %3 = vector.load %arg3[%c0, %c0_1, %c0_2, %c0_3] : memref<1x4x16x128xf32, #tpu.memory_space<vmem>>, vector<1x4x16x128xf32>
    %4 = vector.shape_cast %3 : vector<1x4x16x128xf32> to vector<4x16x128xf32>
    %c0_4 = arith.constant 0 : index
    %c0_5 = arith.constant 0 : index
    %c0_6 = arith.constant 0 : index
    %c0_7 = arith.constant 0 : index
    %5 = vector.load %arg4[%c0_4, %c0_5, %c0_6, %c0_7] : memref<1x4x16x128xbf16, #tpu.memory_space<vmem>>, vector<1x4x16x128xbf16>
    %6 = vector.shape_cast %5 : vector<1x4x16x128xbf16> to vector<4x16x128xbf16>
    %7 = arith.extf %6 : vector<4x16x128xbf16> to vector<4x16x128xf32>
    %cst = arith.constant dense<0xFF800000> : vector<16x128xf32>
    %8 = vector.multi_reduction <maximumf>, %4, %cst [0] : vector<4x16x128xf32> to vector<16x128xf32>
    %9 = vector.shape_cast %8 : vector<16x128xf32> to vector<1x16x128xf32>
    %10 = vector.broadcast %9 : vector<1x16x128xf32> to vector<4x16x128xf32>
    %11 = arith.subf %4, %10 : vector<4x16x128xf32>
    %12 = math.exp %11 : vector<4x16x128xf32>
    %cst_8 = arith.constant dense<0.000000e+00> : vector<16x128xf32>
    %13 = vector.multi_reduction <add>, %12, %cst_8 [0] : vector<4x16x128xf32> to vector<16x128xf32>
    %14 = vector.shape_cast %13 : vector<16x128xf32> to vector<1x16x128xf32>
    %cst_9 = arith.constant 1.000000e+00 : f32
    %15 = vector.broadcast %cst_9 : f32 to vector<1x16x128xf32>
    %16 = arith.divf %15, %14 : vector<1x16x128xf32>
    %17 = vector.broadcast %16 : vector<1x16x128xf32> to vector<4x16x128xf32>
    %18 = arith.mulf %12, %17 : vector<4x16x128xf32>
    %c1_i32 = arith.constant 1 : i32
    %19 = arith.muli %arg1, %c1_i32 : i32
    %20 = arith.addi %19, %arg2 : i32
    %c16_i32 = arith.constant 16 : i32
    %21 = arith.muli %20, %c16_i32 : i32
    %22 = tpu.iota {dimensions = array<i32: 0>} : vector<16x128xi32>
    %23 = vector.broadcast %21 : i32 to vector<16x128xi32>
    %24 = arith.addi %22, %23 : vector<16x128xi32>
    %25 = tpu.iota {dimensions = array<i32: 1>} : vector<16x128xi32>
    %c128_i32 = arith.constant 128 : i32
    %26 = vector.broadcast %c128_i32 : i32 to vector<16x128xi32>
    %27 = arith.muli %24, %26 : vector<16x128xi32>
    %28 = arith.addi %27, %25 : vector<16x128xi32>
    %c256_i32 = arith.constant 256 : i32
    %29 = vector.broadcast %c256_i32 : i32 to vector<16x128xi32>
    %30 = arith.cmpi slt, %28, %29 : vector<16x128xi32>
    %31 = arith.extui %30 : vector<16x128xi1> to vector<16x128xi32>
    %32 = arith.sitofp %31 : vector<16x128xi32> to vector<16x128xf32>
    %33 = vector.shape_cast %32 : vector<16x128xf32> to vector<1x16x128xf32>
    %34 = vector.broadcast %33 : vector<1x16x128xf32> to vector<4x16x128xf32>
    %35 = arith.mulf %18, %34 : vector<4x16x128xf32>
    %c0_10 = arith.constant 0 : index
    %c0_11 = arith.constant 0 : index
    %c0_12 = arith.constant 0 : index
    %36 = vector.load %arg6[%c0_10, %c0_11, %c0_12] : memref<4x8x128xf32, #tpu.memory_space<vmem>>, vector<4x8x128xf32>
    %37 = vector.shape_cast %35 : vector<4x16x128xf32> to vector<4x2x8x128xf32>
    %cst_13 = arith.constant dense<0.000000e+00> : vector<4x8x128xf32>
    %38 = vector.multi_reduction <add>, %37, %cst_13 [1] : vector<4x2x8x128xf32> to vector<4x8x128xf32>
    %39 = arith.addf %36, %38 : vector<4x8x128xf32>
    %c0_14 = arith.constant 0 : index
    %c0_15 = arith.constant 0 : index
    %c0_16 = arith.constant 0 : index
    %40 = vector.load %arg6[%c0_14, %c0_15, %c0_16] : memref<4x8x128xf32, #tpu.memory_space<vmem>>, vector<4x8x128xf32>
    tpu.vector_store %arg6[%c0_14, %c0_15, %c0_16], %39 {strides = array<i32>} : memref<4x8x128xf32, #tpu.memory_space<vmem>>, vector<4x8x128xf32>,
    %c0_17 = arith.constant 0 : index
    %c0_18 = arith.constant 0 : index
    %c0_19 = arith.constant 0 : index
    %41 = vector.load %arg7[%c0_17, %c0_18, %c0_19] : memref<4x8x128xf32, #tpu.memory_space<vmem>>, vector<4x8x128xf32>
    %42 = vector.shape_cast %7 : vector<4x16x128xf32> to vector<4x2x8x128xf32>
    %cst_20 = arith.constant dense<0.000000e+00> : vector<4x8x128xf32>
    %43 = vector.multi_reduction <add>, %42, %cst_20 [1] : vector<4x2x8x128xf32> to vector<4x8x128xf32>
    %44 = arith.addf %41, %43 : vector<4x8x128xf32>
    %c0_21 = arith.constant 0 : index
    %c0_22 = arith.constant 0 : index
    %c0_23 = arith.constant 0 : index
    %45 = vector.load %arg7[%c0_21, %c0_22, %c0_23] : memref<4x8x128xf32, #tpu.memory_space<vmem>>, vector<4x8x128xf32>
    tpu.vector_store %arg7[%c0_21, %c0_22, %c0_23], %44 {strides = array<i32>} : memref<4x8x128xf32, #tpu.memory_space<vmem>>, vector<4x8x128xf32>,
    %c0_24 = arith.constant 0 : index
    %c0_25 = arith.constant 0 : index
    %c0_26 = arith.constant 0 : index
    %46 = vector.load %arg8[%c0_24, %c0_25, %c0_26] : memref<4x8x128xf32, #tpu.memory_space<vmem>>, vector<4x8x128xf32>
    %47 = arith.mulf %35, %7 : vector<4x16x128xf32>
    %48 = vector.shape_cast %47 : vector<4x16x128xf32> to vector<4x2x8x128xf32>
    %cst_27 = arith.constant dense<0.000000e+00> : vector<4x8x128xf32>
    %49 = vector.multi_reduction <add>, %48, %cst_27 [1] : vector<4x2x8x128xf32> to vector<4x8x128xf32>
    %50 = arith.addf %46, %49 : vector<4x8x128xf32>
    %c0_28 = arith.constant 0 : index
    %c0_29 = arith.constant 0 : index
    %c0_30 = arith.constant 0 : index
    %51 = vector.load %arg8[%c0_28, %c0_29, %c0_30] : memref<4x8x128xf32, #tpu.memory_space<vmem>>, vector<4x8x128xf32>
    tpu.vector_store %arg8[%c0_28, %c0_29, %c0_30], %50 {strides = array<i32>} : memref<4x8x128xf32, #tpu.memory_space<vmem>>, vector<4x8x128xf32>,
    %c0_i32_31 = arith.constant 0 : i32
    %52 = arith.cmpi eq, %arg2, %c0_i32_31 : i32
    %53 = arith.extui %52 : i1 to i32
    %c0_i32_32 = arith.constant 0 : i32
    %54 = arith.cmpi ne, %53, %c0_i32_32 : i32
    scf.if %54 {
      %c0_33 = arith.constant 0 : index
      %c0_34 = arith.constant 0 : index
      %c0_35 = arith.constant 0 : index
      %55 = vector.load %arg6[%c0_33, %c0_34, %c0_35] : memref<4x8x128xf32, #tpu.memory_space<vmem>>, vector<4x8x128xf32>
      %cst_36 = arith.constant dense<0.000000e+00> : vector<4x8xf32>
      %56 = vector.multi_reduction <add>, %55, %cst_36 [2] : vector<4x8x128xf32> to vector<4x8xf32>
      %57 = vector.shape_cast %56 : vector<4x8xf32> to vector<4x8x1xf32>
      %cst_37 = arith.constant dense<0.000000e+00> : vector<4x1xf32>
      %58 = vector.multi_reduction <add>, %57, %cst_37 [1] : vector<4x8x1xf32> to vector<4x1xf32>
      %c0_38 = arith.constant 0 : index
      %c0_39 = arith.constant 0 : index
      %c0_40 = arith.constant 0 : index
      %c0_41 = arith.constant 0 : index
      %59 = vector.load %arg5[%c0_38, %c0_39, %c0_40, %c0_41] : memref<1x1x4x3xf32, #tpu.memory_space<vmem>>, vector<1x1x4x1xf32>
      %60 = vector.shape_cast %59 : vector<1x1x4x1xf32> to vector<4x1xf32>
      %61 = vector.shape_cast %58 : vector<4x1xf32> to vector<1x1x4x1xf32>
      tpu.vector_store %arg5[%c0_38, %c0_39, %c0_40, %c0_41], %61 {strides = array<i32>} : memref<1x1x4x3xf32, #tpu.memory_space<vmem>>, vector<1x1x4x1xf32>,
      %c0_42 = arith.constant 0 : index
      %c0_43 = arith.constant 0 : index
      %c0_44 = arith.constant 0 : index
      %62 = vector.load %arg7[%c0_42, %c0_43, %c0_44] : memref<4x8x128xf32, #tpu.memory_space<vmem>>, vector<4x8x128xf32>
      %cst_45 = arith.constant dense<0.000000e+00> : vector<4x8xf32>
      %63 = vector.multi_reduction <add>, %62, %cst_45 [2] : vector<4x8x128xf32> to vector<4x8xf32>
      %64 = vector.shape_cast %63 : vector<4x8xf32> to vector<4x8x1xf32>
      %cst_46 = arith.constant dense<0.000000e+00> : vector<4x1xf32>
      %65 = vector.multi_reduction <add>, %64, %cst_46 [1] : vector<4x8x1xf32> to vector<4x1xf32>
      %c0_47 = arith.constant 0 : index
      %c0_48 = arith.constant 0 : index
      %c0_49 = arith.constant 0 : index
      %c1 = arith.constant 1 : index
      %66 = vector.load %arg5[%c0_47, %c0_48, %c0_49, %c1] : memref<1x1x4x3xf32, #tpu.memory_space<vmem>>, vector<1x1x4x1xf32>
      %67 = vector.shape_cast %66 : vector<1x1x4x1xf32> to vector<4x1xf32>
      %68 = vector.shape_cast %65 : vector<4x1xf32> to vector<1x1x4x1xf32>
      tpu.vector_store %arg5[%c0_47, %c0_48, %c0_49, %c1], %68 {strides = array<i32>} : memref<1x1x4x3xf32, #tpu.memory_space<vmem>>, vector<1x1x4x1xf32>,
      %c0_50 = arith.constant 0 : index
      %c0_51 = arith.constant 0 : index
      %c0_52 = arith.constant 0 : index
      %69 = vector.load %arg8[%c0_50, %c0_51, %c0_52] : memref<4x8x128xf32, #tpu.memory_space<vmem>>, vector<4x8x128xf32>
      %cst_53 = arith.constant dense<0.000000e+00> : vector<4x8xf32>
      %70 = vector.multi_reduction <add>, %69, %cst_53 [2] : vector<4x8x128xf32> to vector<4x8xf32>
      %71 = vector.shape_cast %70 : vector<4x8xf32> to vector<4x8x1xf32>
      %cst_54 = arith.constant dense<0.000000e+00> : vector<4x1xf32>
      %72 = vector.multi_reduction <add>, %71, %cst_54 [1] : vector<4x8x1xf32> to vector<4x1xf32>
      %c0_55 = arith.constant 0 : index
      %c0_56 = arith.constant 0 : index
      %c0_57 = arith.constant 0 : index
      %c2 = arith.constant 2 : index
      %73 = vector.load %arg5[%c0_55, %c0_56, %c0_57, %c2] : memref<1x1x4x3xf32, #tpu.memory_space<vmem>>, vector<1x1x4x1xf32>
      %74 = vector.shape_cast %73 : vector<1x1x4x1xf32> to vector<4x1xf32>
      %75 = vector.shape_cast %72 : vector<4x1xf32> to vector<1x1x4x1xf32>
      tpu.vector_store %arg5[%c0_55, %c0_56, %c0_57, %c2], %75 {strides = array<i32>} : memref<1x1x4x3xf32, #tpu.memory_space<vmem>>, vector<1x1x4x1xf32>,
    } else {
    }
    return
  }
  func.func @transform_0(%arg0: i32, %arg1: i32, %arg2: i32) -> (i32, i32, i32, i32) {
    %c1_i32 = arith.constant 1 : i32
    %0 = arith.muli %arg1, %c1_i32 : i32
    %1 = arith.addi %0, %arg2 : i32
    %c0_i32 = arith.constant 0 : i32
    %c0_i32_0 = arith.constant 0 : i32
    %c0_i32_1 = arith.constant 0 : i32
    return %arg0, %c0_i32, %1, %c0_i32_0 : i32, i32, i32, i32
  }
  func.func @transform_1(%arg0: i32, %arg1: i32, %arg2: i32) -> (i32, i32, i32, i32) {
    %c1_i32 = arith.constant 1 : i32
    %0 = arith.muli %arg1, %c1_i32 : i32
    %1 = arith.addi %0, %arg2 : i32
    %c0_i32 = arith.constant 0 : i32
    %c0_i32_0 = arith.constant 0 : i32
    %c0_i32_1 = arith.constant 0 : i32
    return %arg0, %c0_i32, %1, %c0_i32_0 : i32, i32, i32, i32
  }
  func.func @transform_2(%arg0: i32, %arg1: i32, %arg2: i32) -> (i32, i32, i32, i32) {
    %c0_i32 = arith.constant 0 : i32
    %c0_i32_0 = arith.constant 0 : i32
    %c0_i32_1 = arith.constant 0 : i32
    return %arg0, %arg1, %c0_i32, %c0_i32_0 : i32, i32, i32, i32
  }
}

</mosaic_0001>

<bundles_post_ra>
// kernel: tpu_custom_call.1
= control target key start
LH: loop header
LB: loop body
LE: loop exit
PB: predicated region body
PF: predicated region fallthrough
CT: control target
= control target key end

     0   :  { %7 = vsyncpa [#allocation6], 0  ;;  %s1177_s0 = inlined_call_operand.hbm [shape: f32[2,4,16,128], index: 0, kind: input, shape index: {}]   ;;  %s1178_s1 = inlined_call_operand.hbm [shape: bf16[2,4,16,128], index: 1, kind: input, shape index: {}]   ;;  %s1179_s2 = inlined_call_operand.vmem [shape: f32[2,1,4,3], index: 2, kind: output, shape index: {}]  }
   0x1   :  { %9 = vsyncpa [#allocation6 + $0x1], 0 }
   0x2   :  { %10 = vsyncpa [#allocation8], 0 }
   0x3   :  { %12 = vsyncpa [#allocation8 + $0x1], 0  ;;  %s942_s9 = smov 0   ;;  %s944_s10 = smov 0  }
   0x4   :  { %s946_s11 = smov 0   ;;  %s948_s12 = smov 0  }
   0x5   :  { %s950_s13 = smov 0   ;;  %s952_s14 = smov 0  }
   0x6 LB: > { %s680_s15 = sadd.s32 4294967295, %s918_s14   ;;  %s37_s16 = sadd.s32 1, %s914_s13  ;;  %s918_s14 = sphi %s952_s14, %s18_s14   ;;  %s914_s13 = sphi %s950_s13, %s1190_s13   ;;  %s910_s12 = sphi %s948_s12, %s1189_s12   ;;  %s906_s11 = sphi %s946_s11, %s1188_s11   ;;  %s902_s10 = sphi %s944_s10, %s1187_s10   ;;  %s898_s9 = sphi %s942_s9, %s1186_s9  }
   0x7   : > { %p39_p0 = scmp.ge.s32.totalorder %s37_s16, 2  ;;  %s48_s17 = sadd.s32 1, %s906_s11 }
   0x8   : > { %p55_p1 = scmp.ne.s32.totalorder %s906_s11, %s902_s10  ;;  %p56_p2 = scmp.eq.s32.totalorder %s918_s14, 0 }
   0x9   : > { %s1192_s16 = smov (%p39_p0, %s37_s16), 0  ;;  %p61_p4 = scmp.ne.s32.totalorder %s902_s10, %s898_s9 }
   0xa   : > { %p978_p3 = por %p56_p2, %p55_p1  ;;  %s43_s19 = ssub.s32 %s914_s13, %s1192_s16 }
   0xb   : > { %p62_p5 = scmp.eq.s32.totalorder %s680_s15, 0  ;;  %p46_p6 = scmp.eq.s32.totalorder %s43_s19, 0 }
   0xc   : > { %p730_p8 = scmp.lt.s32.totalorder %s918_s14, 2  ;;  %s994_s22 = sand.u32 1, %s906_s11  }
   0xd   : > { %p985_p7 = por %p62_p5, %p61_p4  ;;  %s698_s23 = sshll.u32 %s914_s13, 10 }
   0xe   : > { %s991_s21 = scalar_select %p46_p6, %s906_s11, %s48_s17  }
   0xf   : > { %s1182_s20 = scalar_select %p985_p7, 1, 0 }
  0x10   : > { %s684_s24 = sshll.u32 %s994_s22, 6  ;;  %s1001_s27 = scalar_lea.hbm %s1177_s0, %s698_s23 }
  0x11   : > { %s147_s28 = scalar_lea.vmem [#allocation5], %s684_s24  ;;  %p1005_p9 = pnand %p730_p8, %p978_p3 }
  0x12   : > { %s157_s29 = sshll.u32 %s147_s28, 4  ;;  %s144_s3 = scalar_lea.sflag [#allocation6], %s994_s22  ;;  %s1009_s29 = int_to_ptr.vmem [resolvable:$true] %s157_s29 }
  0x13   : > { %s804_s4 = scalar_lea.hbm %s1001_s27, 1024  ;;  %p806_p11 = pneg %p1005_p9 }
  0x14   : > { %p805_p10 = scmp.ne.s32.totalorder %s1001_s27, %s804_s4  ;;  %s809_s7 = scalar_lea.hbm %s1177_s0, 2048 }
  0x15   : > { %p810_p0 = scmp.lt.u32.totalorder %s1001_s27, %s1177_s0  ;;  %p811_p1 = scmp.lt.u32.totalorder %s809_s7, %s804_s4 }
  0x16   : > { %p807_p12 = pnand %p806_p11, %p805_p10  ;;  %p813_p3 = scmp.lt.u32.totalorder %s804_s4, %s1001_s27 }
  0x17   : > { %p812_p2 = por %p811_p1, %p810_p0 }
  0x18   : > { %p808_p13 = pneg %p807_p12 }
  0x19   : > { %p814_p4 = por %p813_p3, %p812_p2 }
  0x1b   : > { %p815_p5 = pnand %p814_p4, %p808_p13 }
  0x1d   : > { %818 = shalt.err (!%p815_p5)
}
  0x1e   : > { %s819_s15 = scalar_lea.vmem %s1009_s29, 1024  ;;  %s920_s17 = smov [#allocation5]  }
  0x1f   : > { %p820_p6 = scmp.ne.s32.totalorder %s1009_s29, %s819_s15  ;;  %s824_s18 = sshll.u32 %s920_s17, 4  ;;  %s825_s18 = int_to_ptr.vmem [resolvable:$false] %s824_s18 }
  0x20   : > { %s826_s19 = scalar_lea.vmem %s825_s18, 2048  ;;  %p827_p12 = scmp.lt.s32.totalorder %s1009_s29, %s825_s18 }
  0x21   : > { %p822_p8 = pnand %p820_p6, %p806_p11  ;;  %p828_p0 = scmp.lt.s32.totalorder %s826_s19, %s819_s15 }
  0x23   : > { %p823_p10 = pneg %p822_p8  ;;  %p829_p1 = por %p828_p0, %p827_p12 }
  0x25   : > { %p830_p2 = pnand %p829_p1, %p823_p10 }
  0x27   : > { %833 = shalt.err (!%p830_p2)
}
  0x28   : > { %s921_s23 = smov 128   ;;  %s922_s24 = smov 8  }
  0x29   : > { %726 = dma.hbm_to_vmem [thread:$0]  (!%p1005_p9), %s1001_s27, 1024, %s1009_s29, %s144_s3, %s921_s23, %s921_s23, %s922_s24  }
  0x2a   : > { %p690_p13 = scmp.ge.s32.totalorder %s918_s14, 1  ;;  %p189_p3 = scmp.lt.s32.totalorder %s918_s14, 3 }
  0x2b   : > { %s687_s25 = sshll.u32 %s994_s22, 5  ;;  %s699_s28 = sshll.u32 %s914_s13, 9 }
  0x2c   : > { %p1042_p4 = pnand %p690_p13, %p189_p3  ;;  %s171_s4 = scalar_lea.vmem [#allocation7], %s687_s25 }
  0x2d   : > { %s181_s5 = sshll.u32 %s171_s4, 4  ;;  %s1050_s8 = scalar_lea.hbm %s1178_s1, %s699_s28  ;;  %s1052_s5 = int_to_ptr.vmem [resolvable:$true] %s181_s5 }
  0x2e   : > { %s168_s27 = scalar_lea.sflag [#allocation8], %s994_s22  ;;  %s834_s29 = scalar_lea.hbm %s1050_s8, 512 }
  0x2f   : > { %p835_p5 = scmp.ne.s32.totalorder %s1050_s8, %s834_s29  ;;  %s839_s15 = scalar_lea.hbm %s1178_s1, 1024 }
  0x30   : > { %p840_p10 = scmp.lt.u32.totalorder %s1050_s8, %s1178_s1  ;;  %p841_p12 = scmp.lt.u32.totalorder %s839_s15, %s834_s29 }
  0x31   : > { %p837_p6 = pnand %p835_p5, %p806_p11  ;;  %p843_p1 = scmp.lt.u32.totalorder %s834_s29, %s1050_s8 }
  0x32   : > { %p842_p0 = por %p841_p12, %p840_p10 }
  0x33   : > { %p838_p8 = pneg %p837_p6 }
  0x34   : > { %p844_p2 = por %p843_p1, %p842_p0 }
  0x36   : > { %p845_p13 = pnand %p844_p2, %p838_p8 }
  0x38   : > { %848 = shalt.err (!%p845_p13)
}
  0x39   : > { %s849_s19 = scalar_lea.vmem %s1052_s5, 512  ;;  %s923_s23 = smov [#allocation7]  }
  0x3a   : > { %p850_p3 = scmp.ne.s32.totalorder %s1052_s5, %s849_s19  ;;  %s854_s24 = sshll.u32 %s923_s23, 4  ;;  %s855_s24 = int_to_ptr.vmem [resolvable:$false] %s854_s24 }
  0x3b   : > { %s856_s25 = scalar_lea.vmem %s855_s24, 1024  ;;  %p857_p7 = scmp.lt.s32.totalorder %s1052_s5, %s855_s24 }
  0x3c   : > { %p852_p5 = pnand %p850_p3, %p806_p11  ;;  %p858_p10 = scmp.lt.s32.totalorder %s856_s25, %s849_s19 }
  0x3e   : > { %p853_p6 = pneg %p852_p5  ;;  %p859_p12 = por %p858_p10, %p857_p7 }
  0x40   : > { %p860_p0 = pnand %p859_p12, %p853_p6 }
  0x42   : > { %863 = shalt.err (!%p860_p0)
}
  0x43   : > { %s924_s28 = smov 64   ;;  %s925_s4 = smov 4  }
  0x44   : > { %729 = dma.hbm_to_vmem [thread:$0]  (!%p1005_p9), %s1050_s8, 512, %s1052_s5, %s168_s27, %s924_s28, %s924_s28, %s925_s4  }
  0x45   : > { %193 = sbr.rel (%p1042_p4) target bundleno = 298 (0x12a), region = 28  ;;  %s195_s6 = sand.u32 (!%p1042_p4), 1, %s902_s10  }
  0x46   : > { %s691_s7 = sshll.u32 (!%p1042_p4), %s195_s6, 6  ;;  %s196_s29 = scalar_lea.sflag (!%p1042_p4), [#allocation6], %s195_s6 }
  0x47   : > { %s199_s3 = scalar_lea.vmem (!%p1042_p4), [#allocation5], %s691_s7  ;;  %p1185_p7 = scmp.ne.s32.totalorder (!%p1042_p4), %s1182_s20, 0 }
  0x4c   : > { %889 = dma.done.wait (%p1185_p7), %s196_s29, 1024  }
  0x4d   : > { %891 = vsyncadd (%p1185_p7), %s196_s29, 4294966272  ;;  %s692_s9 = sshll.u32 %s195_s6, 5  ;;  %s205_s15 = scalar_lea.sflag [#allocation8], %s195_s6 }
  0x4e   : > { %s208_s30 = scalar_lea.vmem [#allocation7], %s692_s9 }
  0x4f   : > { %893 = dma.done.wait (%p1185_p7), %s205_s15, 512  }
  0x50   : > { %895 = vsyncadd (%p1185_p7), %s205_s15, 4294966784  ;;  %v1091_v0 = vld [vmem:[%s208_s30 + $0x8] sm:$0xff]   ;;  %v1093_v1 = vld [vmem:[%s208_s30] sm:$0xff]   ;;  %v337_v46 = vlaneseq  ;;  %p240_p9 = scmp.lt.s32.totalorder %s910_s12, 1  ;;  %vm462_vm2 = vcmask 1041409   ;;  %vm464_vm3 = vcmask 1042434  }
  0x51   : > { %v1095_v2 = vld [vmem:[%s208_s30 + $0x10] sm:$0xff]   ;;  %v706_v3 = vunpack.c.l.bf16 %v1091_v0  ;;  %v707_v4 = vunpack.c.h.bf16 %v1091_v0  ;;  %v702_v5 = vunpack.c.l.bf16 %v1093_v1  ;;  %v703_v6 = vunpack.c.h.bf16 %v1093_v1  ;;  %v1101_v7 = vld [vmem:[%s208_s30 + $0x18] sm:$0xff]   ;;  %v263_v8 = vld [vmem:[%s199_s3] sm:$0xff] }
  0x52   : > { %v264_v9 = vld [vmem:[%s199_s3 + $0x8] sm:$0xff]  ;;  %v710_v10 = vunpack.c.l.bf16 %v1095_v2  ;;  %v711_v11 = vunpack.c.h.bf16 %v1095_v2  ;;  %v714_v12 = vunpack.c.l.bf16 %v1101_v7  ;;  %v715_v13 = vunpack.c.h.bf16 %v1101_v7  ;;  %v265_v14 = vld [vmem:[%s199_s3 + $0x10] sm:$0xff]  ;;  %v266_v15 = vld [vmem:[%s199_s3 + $0x18] sm:$0xff]  ;;  %s1194_s12 = smov (!%p240_p9, %s910_s12), 1 }
  0x53   : > { %v267_v16 = vld [vmem:[%s199_s3 + $0x20] sm:$0xff]  ;;  %v384_v17 = vadd.f32 %v707_v4, %v706_v3  ;;  %v383_v18 = vadd.f32 %v703_v6, %v702_v5  ;;  %v268_v19 = vld [vmem:[%s199_s3 + $0x28] sm:$0xff]  ;;  %v269_v20 = vld [vmem:[%s199_s3 + $0x30] sm:$0xff]  ;;  %v338_v48 = vshrl.u32 %v337_v46, 7  ;;  %v344_v63 = vand.u32 127, %v337_v46  ;;  %s693_s20 = sshll.u32 %s1194_s12, 2 }
  0x54   : > { %v270_v21 = vld [vmem:[%s199_s3 + $0x38] sm:$0xff]  ;;  %v287_v22 = vmax.f32 %v263_v8, %v267_v16  ;;  %v288_v23 = vmax.f32 %v265_v14, %v269_v20  ;;  %v290_v24 = vmax.f32 %v264_v9, %v268_v19  ;;  %v385_v25 = vadd.f32 %v711_v11, %v710_v10  ;;  %s246_s5 = scalar_lea.vmem %s1179_s2, %s693_s20 }
  0x55   : > { %477 = vadd.xlane.f32.xlu0 %v384_v17  ;;  %475 = vadd.xlane.f32.xlu1 %v383_v18  ;;  %v386_v26 = vadd.f32 %v715_v13, %v714_v12  ;;  %v291_v27 = vmax.f32 %v266_v15, %v270_v21  ;;  %v339_v55 = vadd.s32 8, %v338_v48  ;;  %v926_v17 = vmov 0.0  }
  0x56   : > { %v289_v28 = vmax.f32 %v287_v22, %v288_v23  ;;  %vm466_vm4 = vcmask 1043459   ;;  %vm469_vm5 = vcmask 3072   ;;  %vm515_vm6 = vcmask 11272  }
  0x57   : > { %v292_v29 = vmax.f32 %v290_v24, %v291_v27  ;;  %vm561_vm7 = vcmask 19472  }
  0x58   : > { %v293_v30 = vsub.f32 %v263_v8, %v289_v28  ;;  %v295_v31 = vsub.f32 %v265_v14, %v289_v28  ;;  %v297_v32 = vsub.f32 %v267_v16, %v289_v28  ;;  %v299_v36 = vsub.f32 %v269_v20, %v289_v28 }
  0x59   : > { %479 = vadd.xlane.f32.xlu0 %v385_v25  ;;  %481 = vadd.xlane.f32.xlu1 %v386_v26  ;;  %v294_v33 = vsub.f32 %v264_v9, %v292_v29  ;;  %v296_v34 = vsub.f32 %v266_v15, %v292_v29  ;;  %v298_v35 = vsub.f32 %v268_v19, %v292_v29  ;;  %v345_v8 = vmul.u32 128, %v338_v48 }
  0x5a   : > { %v301_v37 = vmul.f32 1.442695, %v293_v30  ;;  %v305_v38 = vmul.f32 1.442695, %v295_v31  ;;  %v300_v39 = vsub.f32 %v270_v21, %v292_v29  ;;  %v309_v42 = vmul.f32 1.442695, %v297_v32 }
  0x5b   : > { %v303_v40 = vmul.f32 1.442695, %v294_v33  ;;  %v307_v41 = vmul.f32 1.442695, %v296_v34  ;;  %v311_v43 = vmul.f32 1.442695, %v298_v35  ;;  %v347_v14 = vadd.s32 %v345_v8, %v344_v63 }
  0x5c   : > { %784 = vpow2.f32 %v301_v37  ;;  %v313_v44 = vmul.f32 1.442695, %v299_v36  ;;  %v315_v45 = vmul.f32 1.442695, %v300_v39  ;;  %v346_v9 = vmul.u32 128, %v339_v55 }
  0x5d   : > { %786 = vpow2.f32 %v303_v40  ;;  %vm349_vm0 = vcmp.lt.s32.totalorder %v347_v14, 256 }
  0x5e   : > { %788 = vpow2.f32 %v305_v38  ;;  %v348_v15 = vadd.s32 %v346_v9, %v344_v63  ;;  %v694_v18 = vsel %vm349_vm0, 1.0, %v926_v17 }
  0x5f   : > { %790 = vpow2.f32 %v307_v41 }
  0x60   : > { %792 = vpow2.f32 %v309_v42  ;;  %vm350_vm1 = vcmp.lt.s32.totalorder %v348_v15, 256 }
  0x61   : > { %794 = vpow2.f32 %v311_v43  ;;  %v695_v19 = vsel %vm350_vm1, 1.0, %v926_v17 }
  0x62   : > { %796 = vpow2.f32 %v313_v44 }
  0x63   : > { %798 = vpow2.f32 %v315_v45 }
  0x66   : > { %v785_v47 = vpop.eup %784 }
  0x67   : > { %v787_v49 = vpop.eup %786 }
  0x68   : > { %v789_v50 = vpop.eup %788 }
  0x69   : > { %v791_v51 = vpop.eup %790  ;;  %v317_v52 = vadd.f32 %v789_v50, %v785_v47 }
  0x6a   : > { %v793_v53 = vpop.eup %792  ;;  %v320_v54 = vadd.f32 %v791_v51, %v787_v49 }
  0x6b   : > { %v795_v56 = vpop.eup %794  ;;  %v318_v57 = vadd.f32 %v793_v53, %v317_v52 }
  0x6c   : > { %v797_v58 = vpop.eup %796  ;;  %v321_v59 = vadd.f32 %v795_v56, %v320_v54 }
  0x6d   : > { %v799_v60 = vpop.eup %798  ;;  %v319_v61 = vadd.f32 %v797_v58, %v318_v57 }
  0x6e   : > { %v322_v62 = vadd.f32 %v799_v60, %v321_v59 }
  0x6f   : > { %800 = vrcp.f32 %v319_v61 }
  0x70   : > { %802 = vrcp.f32 %v322_v62 }
  0x79   : > { %v801_v16 = vpop.eup %800 }
  0x7a   : > { %v803_v20 = vpop.eup %802  ;;  %v331_v21 = vmul.f32 %v801_v16, %v793_v53  ;;  %v327_v22 = vmul.f32 %v801_v16, %v785_v47  ;;  %v333_v23 = vmul.f32 %v801_v16, %v797_v58  ;;  %v329_v24 = vmul.f32 %v801_v16, %v789_v50 }
  0x7b   : > { %v332_v25 = vmul.f32 %v803_v20, %v795_v56  ;;  %v328_v26 = vmul.f32 %v803_v20, %v787_v49  ;;  %v334_v27 = vmul.f32 %v803_v20, %v799_v60  ;;  %v330_v28 = vmul.f32 %v803_v20, %v791_v51 }
  0x7c   : > { %v359_v29 = vmul.f32 %v694_v18, %v331_v21  ;;  %v355_v30 = vmul.f32 %v694_v18, %v327_v22  ;;  %v361_v31 = vmul.f32 %v694_v18, %v333_v23  ;;  %v357_v32 = vmul.f32 %v694_v18, %v329_v24 }
  0x7d   : > { %v360_v33 = vmul.f32 %v695_v19, %v332_v25  ;;  %v356_v34 = vmul.f32 %v695_v19, %v328_v26  ;;  %v362_v35 = vmul.f32 %v695_v19, %v334_v27  ;;  %v358_v36 = vmul.f32 %v695_v19, %v330_v28 }
  0x7e   : > { %v399_v40 = vmul.f32 %v702_v5, %v355_v30  ;;  %v401_v41 = vmul.f32 %v706_v3, %v357_v32  ;;  %v405_v45 = vmul.f32 %v714_v12, %v361_v31  ;;  %v403_v5 = vmul.f32 %v710_v10, %v359_v29 }
  0x7f   : > { %v369_v37 = vadd.f32 %v360_v33, %v359_v29  ;;  %v367_v38 = vadd.f32 %v356_v34, %v355_v30  ;;  %v370_v39 = vadd.f32 %v362_v35, %v361_v31  ;;  %v368_v42 = vadd.f32 %v358_v36, %v357_v32 }
  0x80   : > { %v400_v43 = vmul.f32 %v703_v6, %v356_v34  ;;  %v402_v44 = vmul.f32 %v707_v4, %v358_v36  ;;  %v406_v46 = vmul.f32 %v715_v13, %v362_v35  ;;  %v404_v1 = vmul.f32 %v711_v11, %v360_v33 }
  0x81   : > { %430 = vadd.xlane.f32.xlu1 %v369_v37  ;;  %426 = vadd.xlane.f32.xlu0 %v367_v38 }
  0x82   : > { %v407_v3 = vadd.f32 %v400_v43, %v399_v40  ;;  %v408_v47 = vadd.f32 %v402_v44, %v401_v41  ;;  %v410_v0 = vadd.f32 %v406_v46, %v405_v45  ;;  %v409_v4 = vadd.f32 %v404_v1, %v403_v5 }
  0x85   : > { %432 = vadd.xlane.f32.xlu1 %v370_v39  ;;  %428 = vadd.xlane.f32.xlu0 %v368_v42 }
  0x89   : > { %521 = vadd.xlane.f32.xlu1 %v407_v3  ;;  %523 = vadd.xlane.f32.xlu0 %v408_v47 }
  0x8d   : > { %527 = vadd.xlane.f32.xlu1 %v410_v0  ;;  %525 = vadd.xlane.f32.xlu0 %v409_v4 }
  0xe2   : > { %v478_v6 = vpop.xlane.xlu0 %477  ;;  %v476_v12 = vpop.xlane.xlu1 %475 }
  0xe3   : > { %v489_v7 = vrot.slane %v478_v6, 4  ;;  %v483_v13 = vrot.slane %v476_v12, 4 }
  0xe5   : > { %v490_v49 = vadd.f32 %v489_v7, %v478_v6  ;;  %v484_v10 = vadd.f32 %v483_v13, %v476_v12 }
  0xe6   : > { %v480_v48 = vpop.xlane.xlu0 %479  ;;  %v482_v50 = vpop.xlane.xlu1 %481 }
  0xe7   : > { %v495_v51 = vrot.slane %v480_v48, 4  ;;  %v491_v52 = vrot.slane %v490_v49, 2  ;;  %v501_v53 = vrot.slane %v482_v50, 4  ;;  %v485_v54 = vrot.slane %v484_v10, 2 }
  0xe9   : > { %v496_v2 = vadd.f32 %v495_v51, %v480_v48  ;;  %v492_v11 = vadd.f32 %v491_v52, %v490_v49  ;;  %v502_v55 = vadd.f32 %v501_v53, %v482_v50  ;;  %v486_v56 = vadd.f32 %v485_v54, %v484_v10 }
  0xeb   : > { %v497_v57 = vrot.slane %v496_v2, 2  ;;  %v493_v62 = vrot.slane %v492_v11, 1  ;;  %v503_v63 = vrot.slane %v502_v55, 2  ;;  %v487_v8 = vrot.slane %v486_v56, 1 }
  0xed   : > { %v498_v15 = vadd.f32 %v497_v57, %v496_v2  ;;  %v494_v22 = vadd.f32 %v493_v62, %v492_v11  ;;  %v504_v23 = vadd.f32 %v503_v63, %v502_v55  ;;  %v488_v24 = vadd.f32 %v487_v8, %v486_v56 }
  0xef   : > { %v499_v28 = vrot.slane %v498_v15, 1  ;;  %v505_v34 = vrot.slane %v504_v23, 1  ;;  %v511_v37 = vsel %vm462_vm2, %v494_v22, %v488_v24 }
  0xf1   : > { %v500_v41 = vadd.f32 %v499_v28, %v498_v15  ;;  %v506_v0 = vadd.f32 %v505_v34, %v504_v23 }
  0xf3   : > { %v512_v49 = vsel %vm464_vm3, %v500_v41, %v511_v37 }
 0x10e   : > { %v431_v58 = vpop.xlane.xlu1 %430  ;;  %v427_v59 = vpop.xlane.xlu0 %426 }
 0x10f   : > { %v446_v60 = vrot.slane %v431_v58, 4  ;;  %v434_v61 = vrot.slane %v427_v59, 4 }
 0x111   : > { %v447_v9 = vadd.f32 %v446_v60, %v431_v58  ;;  %v435_v14 = vadd.f32 %v434_v61, %v427_v59  ;;  %v513_v60 = vsel %vm466_vm4, %v506_v0, %v512_v49 }
 0x112   : > { %v433_v16 = vpop.xlane.xlu1 %432  ;;  %v429_v17 = vpop.xlane.xlu0 %428 }
 0x113   : > { %v448_v18 = vrot.slane %v447_v9, 2  ;;  %v436_v19 = vrot.slane %v435_v14, 2  ;;  %v452_v20 = vrot.slane %v433_v16, 4  ;;  %v440_v21 = vrot.slane %v429_v17, 4 }
 0x115   : > { %v437_v25 = vadd.f32 %v436_v19, %v435_v14  ;;  %v453_v26 = vadd.f32 %v452_v20, %v433_v16  ;;  %v441_v27 = vadd.f32 %v440_v21, %v429_v17  ;;  %v449_v29 = vadd.f32 %v448_v18, %v447_v9 }
 0x116   : > { %v522_v30 = vpop.xlane.xlu1 %521  ;;  %v524_v31 = vpop.xlane.xlu0 %523 }
 0x117   : > { %v454_v32 = vrot.slane %v453_v26, 2  ;;  %v442_v33 = vrot.slane %v441_v27, 2  ;;  %v529_v35 = vrot.slane %v522_v30, 4  ;;  %v535_v36 = vrot.slane %v524_v31, 4 }
 0x118   : > { %v438_v38 = vrot.slane %v437_v25, 1  ;;  %v450_v42 = vrot.slane %v449_v29, 1 }
 0x119   : > { %v455_v39 = vadd.f32 %v454_v32, %v453_v26  ;;  %v443_v40 = vadd.f32 %v442_v33, %v441_v27  ;;  %v530_v43 = vadd.f32 %v529_v35, %v522_v30  ;;  %v536_v44 = vadd.f32 %v535_v36, %v524_v31 }
 0x11a   : > { %v528_v45 = vpop.xlane.xlu1 %527  ;;  %v526_v46 = vpop.xlane.xlu0 %525  ;;  %v439_v12 = vadd.f32 %v438_v38, %v437_v25  ;;  %v451_v10 = vadd.f32 %v450_v42, %v449_v29 }
 0x11b   : > { %v456_v5 = vrot.slane %v455_v39, 1  ;;  %v444_v3 = vrot.slane %v443_v40, 1  ;;  %v547_v47 = vrot.slane %v528_v45, 4  ;;  %v541_v1 = vrot.slane %v526_v46, 4 }
 0x11c   : > { %v531_v4 = vrot.slane %v530_v43, 2  ;;  %v537_v6 = vrot.slane %v536_v44, 2 }
 0x11d   : > { %v445_v7 = vadd.f32 %v444_v3, %v443_v40  ;;  %v548_v13 = vadd.f32 %v547_v47, %v528_v45  ;;  %v542_v48 = vadd.f32 %v541_v1, %v526_v46  ;;  %v457_v52 = vadd.f32 %v456_v5, %v455_v39 }
 0x11e   : > { %v532_v50 = vadd.f32 %v531_v4, %v530_v43  ;;  %v538_v51 = vadd.f32 %v537_v6, %v536_v44 }
 0x11f   : > { %v463_v53 = vsel %vm462_vm2, %v445_v7, %v439_v12  ;;  %v549_v54 = vrot.slane %v548_v13, 2  ;;  %v543_v2 = vrot.slane %v542_v48, 2 }
 0x120   : > { %v465_v11 = vsel %vm464_vm3, %v451_v10, %v463_v53  ;;  %v533_v55 = vrot.slane %v532_v50, 1  ;;  %v539_v56 = vrot.slane %v538_v51, 1 }
 0x121   : > { %v467_v57 = vsel %vm466_vm4, %v457_v52, %v465_v11  ;;  %v550_v58 = vadd.f32 %v549_v54, %v548_v13  ;;  %v544_v59 = vadd.f32 %v543_v2, %v542_v48 }
 0x122   : > { %470 = vst.msk [vmem:[%s246_s5] sm:$0xf] %vm469_vm5, %v467_v57  ;;  %v534_v61 = vadd.f32 %v533_v55, %v532_v50  ;;  %v540_v62 = vadd.f32 %v539_v56, %v538_v51 }
 0x123   : > { %v551_v63 = vrot.slane %v550_v58, 1  ;;  %516 = vst.msk [vmem:[%s246_s5] sm:$0xf] %vm515_vm6, %v513_v60  ;;  %v545_v8 = vrot.slane %v544_v59, 1 }
 0x124   : > { %v557_v15 = vsel %vm462_vm2, %v540_v62, %v534_v61 }
 0x125   : > { %v552_v9 = vadd.f32 %v551_v63, %v550_v58  ;;  %v546_v14 = vadd.f32 %v545_v8, %v544_v59 }
 0x127   : > { %v558_v16 = vsel %vm464_vm3, %v546_v14, %v557_v15 }
 0x128   : > { %v559_v17 = vsel %vm466_vm4, %v552_v9, %v558_v16 }
 0x129   : > { %562 = vst.msk [vmem:[%s246_s5] sm:$0xf] %vm561_vm7, %v559_v17 }
 0x12a PF: > { %s18_s14 = sadd.s32 1, %s918_s14   ;;  %s1186_s9 = smov %s902_s10 }
 0x12b   : > { %p15_p11 = scmp.ge.s32.totalorder %s18_s14, 4   ;;  %s1187_s10 = smov %s906_s11 }
 0x12c   : > { %s1188_s11 = smov %s991_s21  ;;  %s1189_s12 = smov %s914_s13 }
 0x12d   : > { %s1190_s13 = smov %s1192_s16  ;;  %17 = sbr.rel (!%p15_p11) target bundleno = 6 (0x6), region = 89 }
 0x134   :  { %588 = vsyncpa [#allocation6], 1 }
 0x135   :  { %590 = vsyncpa [#allocation6 + $0x1], 1 }
 0x136   :  { %591 = vsyncpa [#allocation8], 1 }
 0x137   :  { %593 = vsyncpa [#allocation8 + $0x1], 1 }

</bundles_post_ra>
